<compile_context>
chip_gen: v6e
topology: v6e:2x2x1
jax: 0.10.0
libtpu: 0.0.40
codegen_flags: <defaults>
</compile_context>

<pallas_src>
import jax
import jax.numpy as jnp
from jax.experimental import pallas as pl
from jax.experimental.pallas import tpu as pltpu


_VMEM_PIPELINE_BUDGET = 40 << 20   # pipeline-buffer budget; safe on v7x (64 MiB/TC)
_VMEM_LIMIT_CAP = 56 << 20         # explicit scoped-VMEM limit (above v5e/v6e defaults)


def _conv_bn_relu_kernel(x_ref, w_ref, b_ref, o_ref):
    # x_ref: (1, C1, TL)    activation tile (channels x lanes), native dtype
    # w_ref: (TC2, C1)      BN-folded conv weight, cast to activation dtype
    # b_ref: (TC2, 1)       BN-folded bias, f32
    # o_ref: (1, TC2, TL)
    y = jnp.dot(w_ref[...], x_ref[0], preferred_element_type=jnp.float32)  # (TC2, TL)
    y = y + b_ref[...]                                 # broadcast bias along lanes
    o_ref[0] = jnp.maximum(y, 0.0).astype(o_ref.dtype)


def _pick_c2_tile(C2):
    """Bound the weight block / f32 intermediate for large output-channel counts."""
    if C2 <= 512:
        return C2
    for cand in (512, 256, 128):
        if C2 % cand == 0:
            return cand
    return C2  # full extent is always a legal block dim


def _pick_spatial_tile(HW, per_lane_bytes, fixed_bytes, tl_target):
    """Largest lane-dense spatial tile that fits the VMEM budget, preferring a
    tile that exactly divides HW so no wrapper pad/slice is needed."""
    budget = max(_VMEM_PIPELINE_BUDGET - fixed_bytes, 0)
    max_by_vmem = budget // max(per_lane_bytes, 1)
    cap = max(128, min(int(tl_target), int(max_by_vmem)))
    if HW <= cap:
        return HW, False                  # full extent: always legal, no pad
    t = (cap // 128) * 128
    while t >= 128:
        if HW % t == 0:
            return t, False               # exact divisor: no pad, no tail slice
        t -= 128
    # TODO(synk): rare fallback (HW has no 128-multiple divisor <= cap) still pads;
    # an in-kernel masked tail store would remove the extra HBM traffic.
    return (cap // 128) * 128, True


def conv_module_forward(x_nchw, conv_weight, bn_gamma, bn_beta,
                        bn_running_mean, bn_running_var, eps=1e-5,
                        tl_target=2048):
    """x_nchw: (N, C1, H, W); conv_weight: (C2, C1, 1, 1) (PyTorch layout)."""
    N, C1, H, W = x_nchw.shape
    C2 = conv_weight.shape[0]
    HW = H * W
    out_dtype = x_nchw.dtype
    x_itemsize = jnp.dtype(x_nchw.dtype).itemsize
    out_itemsize = jnp.dtype(out_dtype).itemsize

    # ---- glue: fold eval-mode BN into weight + per-channel bias (O(C1*C2)) ----
    inv_std = 1.0 / jnp.sqrt(bn_running_var.astype(jnp.float32) + eps)
    scale = bn_gamma.astype(jnp.float32) * inv_std                          # (C2,)
    w_scaled = (conv_weight.reshape(C2, C1).astype(jnp.float32)
                * scale[:, None])                                           # (C2, C1)
    bias = (bn_beta.astype(jnp.float32)
            - bn_running_mean.astype(jnp.float32) * scale).reshape(C2, 1)
    # match MXU operand dtypes (bf16 x bf16 at native rate); f32 accumulate in-kernel
    w_scaled = w_scaled.astype(x_nchw.dtype)
    w_itemsize = jnp.dtype(w_scaled.dtype).itemsize

    # ---- tiling: channel tile + lane-dense spatial tile under a VMEM budget ----
    TC2 = _pick_c2_tile(C2)
    n_c2 = C2 // TC2
    weight_bufs = 1 if n_c2 == 1 else 2
    fixed_bytes = weight_bufs * TC2 * C1 * w_itemsize + weight_bufs * TC2 * 4
    # double-buffered x/out blocks + f32 intermediate per lane
    per_lane_bytes = 2 * C1 * x_itemsize + 2 * TC2 * out_itemsize + 4 * TC2

    TL, need_pad = _pick_spatial_tile(HW, per_lane_bytes, fixed_bytes, tl_target)

    x_mat = x_nchw.reshape(N, C1, HW)        # free reshape, no transpose, native dtype
    HW_eff = HW
    if need_pad:
        HW_eff = pl.cdiv(HW, TL) * TL
        x_mat = jnp.pad(x_mat, ((0, 0), (0, 0), (0, HW_eff - HW)))

    # Ensure >= 2 parallel grid steps so both v7x TensorCores get work.
    if N * n_c2 * (HW_eff // TL) == 1 and TL % 256 == 0:
        TL //= 2
    n_sp = HW_eff // TL
    grid = (N, n_c2, n_sp)                   # channel tile outer, spatial innermost
                                             # -> weight block stays resident per c-tile

    needed_vmem = fixed_bytes + per_lane_bytes * TL + (1 << 20)
    vmem_limit = int(min(max(2 * needed_vmem, 32 << 20), _VMEM_LIMIT_CAP))

    flops = 2 * N * HW_eff * C1 * C2
    bytes_accessed = (N * C1 * HW_eff * x_itemsize
                      + N * C2 * C1 * w_itemsize
                      + N * C2 * HW_eff * out_itemsize)

    def build_specs(single_buffer_weights):
        kw = {}
        if single_buffer_weights and n_c2 == 1:
            # invariant operands: don't burn VMEM on a second pipeline buffer
            kw = dict(pipeline_mode=pl.Buffered(1))
        in_specs = [
            pl.BlockSpec((1, C1, TL), lambda n, c, j: (n, 0, j)),
            pl.BlockSpec((TC2, C1), lambda n, c, j: (c, 0), **kw),
            pl.BlockSpec((TC2, 1), lambda n, c, j: (c, 0), **kw),
        ]
        out_specs = pl.BlockSpec((1, TC2, TL), lambda n, c, j: (n, c, j))
        return in_specs, out_specs

    def run(single_buffer_weights):
        in_specs, out_specs = build_specs(single_buffer_weights)
        return pl.pallas_call(
            _conv_bn_relu_kernel,
            out_shape=jax.ShapeDtypeStruct((N, C2, HW_eff), out_dtype),
            grid_spec=pltpu.PrefetchScalarGridSpec(
                num_scalar_prefetch=0,
                grid=grid,
                in_specs=in_specs,
                out_specs=out_specs,
            ),
            compiler_params=pltpu.CompilerParams(
                dimension_semantics=("parallel", "parallel", "parallel"),
                vmem_limit_bytes=vmem_limit),
            cost_estimate=pl.CostEstimate(
                flops=flops, transcendentals=0, bytes_accessed=bytes_accessed),
        )(x_mat, w_scaled, bias)

    try:
        out = run(single_buffer_weights=True)
    except Exception:
        # conservative fallback if single-buffered pipeline_mode is rejected
        out = run(single_buffer_weights=False)

    if need_pad:
        out = out[:, :, :HW]
    return out.reshape(N, C2, H, W)          # free reshape, already NCHW


if __name__ == "__main__":
    # Small shapes consistent with the module: c1=4, c2=8, input (2, 4, 16, 16).
    N, C1, C2, H, W = 2, 4, 8, 16, 16

    key = jax.random.PRNGKey(0)
    kx, kw, kg, kb, km, kv = jax.random.split(key, 6)

    x = jax.random.normal(kx, (N, C1, H, W), dtype=jnp.float32)
    conv_weight = jax.random.normal(kw, (C2, C1, 1, 1), dtype=jnp.float32) * 0.1
    bn_gamma = 1.0 + 0.1 * jax.random.normal(kg, (C2,), dtype=jnp.float32)
    bn_beta = 0.1 * jax.random.normal(kb, (C2,), dtype=jnp.float32)
    bn_mean = 0.05 * jax.random.normal(km, (C2,), dtype=jnp.float32)
    bn_var = jnp.abs(jax.random.normal(kv, (C2,), dtype=jnp.float32)) + 0.5

    y = conv_module_forward(x, conv_weight, bn_gamma, bn_beta, bn_mean, bn_var)
    y = jax.block_until_ready(y)

    # plain-JAX reference for the same eval-mode semantics
    w_mat = conv_weight.reshape(C2, C1)
    conv_ref = jnp.einsum('nchw,oc->nohw', x, w_mat)
    inv_std = 1.0 / jnp.sqrt(bn_var + 1e-5)
    ref = (conv_ref - bn_mean[None, :, None, None]) \
          * (bn_gamma * inv_std)[None, :, None, None] \
          + bn_beta[None, :, None, None]
    ref = jnp.maximum(ref, 0.0)

    assert y.shape == (N, C2, H, W), y.shape
    assert jnp.allclose(y, ref, atol=1e-5, rtol=1e-5), float(jnp.max(jnp.abs(y - ref)))
    print("KERNEL_OK")
</pallas_src>

<mosaic_0001>
module attributes {stable_mosaic.version = 11 : i64} {
  func.func @_conv_bn_relu_kernel(%arg0: i32, %arg1: i32, %arg2: i32, %arg3: memref<1x4x256xf32, #tpu.memory_space<vmem>>, %arg4: memref<8x4xf32, #tpu.memory_space<vmem>>, %arg5: memref<8x1xf32, #tpu.memory_space<vmem>>, %arg6: memref<1x8x256xf32, #tpu.memory_space<vmem>>) attributes {dimension_semantics = [#tpu.dimension_semantics<parallel>, #tpu.dimension_semantics<parallel>, #tpu.dimension_semantics<parallel>], iteration_bounds = array<i64: 2, 1, 1>, scalar_prefetch = 0 : i64, scratch_operands = 0 : i64, tpu.core_type = #tpu.core_type<tc>, window_params = [{transform_indices = @transform_0, window_bounds = array<i64: 1, 4, 256>}, {pipeline_mode = #tpu.pipeline_mode<synchronous>, transform_indices = @transform_1, window_bounds = array<i64: 8, 4>}, {pipeline_mode = #tpu.pipeline_mode<synchronous>, transform_indices = @transform_2, window_bounds = array<i64: 8, 1>}, {transform_indices = @transform_3, window_bounds = array<i64: 1, 8, 256>}]} {
    %c0 = arith.constant 0 : index
    %c0_0 = arith.constant 0 : index
    %0 = vector.load %arg4[%c0, %c0_0] : memref<8x4xf32, #tpu.memory_space<vmem>>, vector<8x4xf32>
    %c0_1 = arith.constant 0 : index
    %c0_2 = arith.constant 0 : index
    %c0_3 = arith.constant 0 : index
    %1 = vector.load %arg3[%c0_1, %c0_2, %c0_3] : memref<1x4x256xf32, #tpu.memory_space<vmem>>, vector<1x4x256xf32>
    %2 = vector.shape_cast %1 : vector<1x4x256xf32> to vector<4x256xf32>
    %cst = arith.constant dense<0.000000e+00> : vector<8x256xf32>
    %3 = tpu.matmul %0, %2, %cst {dimension_numbers = #tpu.dot_dimension_numbers<[1], [0], [0], [1], [0, 0, 1, 1], [], []>} : vector<8x4xf32>, vector<4x256xf32>, vector<8x256xf32> -> vector<8x256xf32>
    %c0_4 = arith.constant 0 : index
    %c0_5 = arith.constant 0 : index
    %4 = vector.load %arg5[%c0_4, %c0_5] : memref<8x1xf32, #tpu.memory_space<vmem>>, vector<8x1xf32>
    %5 = vector.broadcast %4 : vector<8x1xf32> to vector<8x256xf32>
    %6 = arith.addf %3, %5 : vector<8x256xf32>
    %cst_6 = arith.constant 0.000000e+00 : f32
    %7 = vector.broadcast %cst_6 : f32 to vector<8x256xf32>
    %8 = arith.maximumf %6, %7 : vector<8x256xf32>
    %c0_7 = arith.constant 0 : index
    %c0_8 = arith.constant 0 : index
    %c0_9 = arith.constant 0 : index
    %9 = vector.load %arg6[%c0_7, %c0_8, %c0_9] : memref<1x8x256xf32, #tpu.memory_space<vmem>>, vector<1x8x256xf32>
    %10 = vector.shape_cast %9 : vector<1x8x256xf32> to vector<8x256xf32>
    %11 = vector.shape_cast %8 : vector<8x256xf32> to vector<1x8x256xf32>
    tpu.vector_store %arg6[%c0_7, %c0_8, %c0_9], %11 {strides = array<i32>} : memref<1x8x256xf32, #tpu.memory_space<vmem>>, vector<1x8x256xf32>,
    return
  }
  func.func @transform_0(%arg0: i32, %arg1: i32, %arg2: i32) -> (i32, i32, i32) {
    %c0_i32 = arith.constant 0 : i32
    %c0_i32_0 = arith.constant 0 : i32
    return %arg0, %c0_i32, %arg2 : i32, i32, i32
  }
  func.func @transform_1(%arg0: i32, %arg1: i32, %arg2: i32) -> (i32, i32) {
    %c0_i32 = arith.constant 0 : i32
    %c0_i32_0 = arith.constant 0 : i32
    return %arg1, %c0_i32 : i32, i32
  }
  func.func @transform_2(%arg0: i32, %arg1: i32, %arg2: i32) -> (i32, i32) {
    %c0_i32 = arith.constant 0 : i32
    %c0_i32_0 = arith.constant 0 : i32
    return %arg1, %c0_i32 : i32, i32
  }
  func.func @transform_3(%arg0: i32, %arg1: i32, %arg2: i32) -> (i32, i32, i32) {
    %c0_i32 = arith.constant 0 : i32
    return %arg0, %arg1, %arg2 : i32, i32, i32
  }
}

module attributes {stable_mosaic.version = 11 : i64} {
  func.func @_conv_bn_relu_kernel(%arg0: i32, %arg1: i32, %arg2: i32, %arg3: memref<1x4x256xf32, #tpu.memory_space<vmem>>, %arg4: memref<8x4xf32, #tpu.memory_space<vmem>>, %arg5: memref<8x1xf32, #tpu.memory_space<vmem>>, %arg6: memref<1x8x256xf32, #tpu.memory_space<vmem>>) attributes {dimension_semantics = [#tpu.dimension_semantics<parallel>, #tpu.dimension_semantics<parallel>, #tpu.dimension_semantics<parallel>], iteration_bounds = array<i64: 2, 1, 1>, scalar_prefetch = 0 : i64, scratch_operands = 0 : i64, tpu.core_type = #tpu.core_type<tc>, window_params = [{transform_indices = @transform_0, window_bounds = array<i64: 1, 4, 256>}, {transform_indices = @transform_1, window_bounds = array<i64: 8, 4>}, {transform_indices = @transform_2, window_bounds = array<i64: 8, 1>}, {transform_indices = @transform_3, window_bounds = array<i64: 1, 8, 256>}]} {
    %c0 = arith.constant 0 : index
    %c0_0 = arith.constant 0 : index
    %0 = vector.load %arg4[%c0, %c0_0] : memref<8x4xf32, #tpu.memory_space<vmem>>, vector<8x4xf32>
    %c0_1 = arith.constant 0 : index
    %c0_2 = arith.constant 0 : index
    %c0_3 = arith.constant 0 : index
    %1 = vector.load %arg3[%c0_1, %c0_2, %c0_3] : memref<1x4x256xf32, #tpu.memory_space<vmem>>, vector<1x4x256xf32>
    %2 = vector.shape_cast %1 : vector<1x4x256xf32> to vector<4x256xf32>
    %cst = arith.constant dense<0.000000e+00> : vector<8x256xf32>
    %3 = tpu.matmul %0, %2, %cst {dimension_numbers = #tpu.dot_dimension_numbers<[1], [0], [0], [1], [0, 0, 1, 1], [], []>} : vector<8x4xf32>, vector<4x256xf32>, vector<8x256xf32> -> vector<8x256xf32>
    %c0_4 = arith.constant 0 : index
    %c0_5 = arith.constant 0 : index
    %4 = vector.load %arg5[%c0_4, %c0_5] : memref<8x1xf32, #tpu.memory_space<vmem>>, vector<8x1xf32>
    %5 = vector.broadcast %4 : vector<8x1xf32> to vector<8x256xf32>
    %6 = arith.addf %3, %5 : vector<8x256xf32>
    %cst_6 = arith.constant 0.000000e+00 : f32
    %7 = vector.broadcast %cst_6 : f32 to vector<8x256xf32>
    %8 = arith.maximumf %6, %7 : vector<8x256xf32>
    %c0_7 = arith.constant 0 : index
    %c0_8 = arith.constant 0 : index
    %c0_9 = arith.constant 0 : index
    %9 = vector.load %arg6[%c0_7, %c0_8, %c0_9] : memref<1x8x256xf32, #tpu.memory_space<vmem>>, vector<1x8x256xf32>
    %10 = vector.shape_cast %9 : vector<1x8x256xf32> to vector<8x256xf32>
    %11 = vector.shape_cast %8 : vector<8x256xf32> to vector<1x8x256xf32>
    tpu.vector_store %arg6[%c0_7, %c0_8, %c0_9], %11 {strides = array<i32>} : memref<1x8x256xf32, #tpu.memory_space<vmem>>, vector<1x8x256xf32>,
    return
  }
  func.func @transform_0(%arg0: i32, %arg1: i32, %arg2: i32) -> (i32, i32, i32) {
    %c0_i32 = arith.constant 0 : i32
    %c0_i32_0 = arith.constant 0 : i32
    return %arg0, %c0_i32, %arg2 : i32, i32, i32
  }
  func.func @transform_1(%arg0: i32, %arg1: i32, %arg2: i32) -> (i32, i32) {
    %c0_i32 = arith.constant 0 : i32
    %c0_i32_0 = arith.constant 0 : i32
    return %arg1, %c0_i32 : i32, i32
  }
  func.func @transform_2(%arg0: i32, %arg1: i32, %arg2: i32) -> (i32, i32) {
    %c0_i32 = arith.constant 0 : i32
    %c0_i32_0 = arith.constant 0 : i32
    return %arg1, %c0_i32 : i32, i32
  }
  func.func @transform_3(%arg0: i32, %arg1: i32, %arg2: i32) -> (i32, i32, i32) {
    %c0_i32 = arith.constant 0 : i32
    return %arg0, %arg1, %arg2 : i32, i32, i32
  }
}

</mosaic_0001>

<bundles_post_ra>
// kernel: tpu_custom_call.1
= control target key start
LH: loop header
LB: loop body
LE: loop exit
PB: predicated region body
PF: predicated region fallthrough
CT: control target
= control target key end

     0   :  { %8 = vsyncpa [#allocation3], 0  ;;  %s752_s0 = inlined_call_operand.vmem [shape: f32[2,4,256], index: 0, kind: input, shape index: {}]   ;;  %s753_s1 = inlined_call_operand.vmem [shape: f32[8,4], index: 1, kind: input, shape index: {}]   ;;  %s754_s2 = inlined_call_operand.vmem [shape: f32[8,1], index: 2, kind: input, shape index: {}]   ;;  %s755_s3 = inlined_call_operand.hbm [shape: f32[2,8,256], index: 3, kind: output, shape index: {}]  }
   0x1   :  { %10 = vsyncpa [#allocation3 + $0x1], 0  ;;  %s647_s12 = smov 0   ;;  %s649_s13 = smov 0  }
   0x2   :  { %s651_s14 = smov 0   ;;  %s653_s15 = smov 0  }
   0x3   :  { %s655_s16 = smov 0   ;;  %s657_s17 = smov 0  }
   0x4 LB: > { %s467_s18 = sadd.s32 4294967295, %s622_s17   ;;  %s468_s19 = sadd.s32 4294967294, %s622_s17   ;;  %s622_s17 = sphi %s657_s17, %s16_s17   ;;  %s618_s16 = sphi %s655_s16, %s762_s16   ;;  %s614_s15 = sphi %s653_s15, %s761_s15   ;;  %s610_s14 = sphi %s651_s14, %s760_s14   ;;  %s606_s13 = sphi %s649_s13, %s759_s13   ;;  %s602_s12 = sphi %s647_s12, %s758_s12  }
   0x5   : > { %s35_s20 = sadd.s32 1, %s618_s16  ;;  %s126_s21 = sadd.s32 1, %s610_s14 }
   0x6   : > { %p37_p0 = scmp.ge.s32.totalorder %s35_s20, 2  ;;  %p136_p1 = scmp.ne.s32.totalorder %s610_s14, %s606_s13 }
   0x7   : > { %p137_p2 = scmp.eq.s32.totalorder %s467_s18, 1  ;;  %p142_p3 = scmp.ne.s32.totalorder %s606_s13, %s602_s12 }
   0x8   : > { %s764_s20 = smov (%p37_p0, %s35_s20), 0  ;;  %p143_p5 = scmp.eq.s32.totalorder %s468_s19, 1 }
   0x9   : > { %p687_p4 = por %p137_p2, %p136_p1  ;;  %s119_s23 = ssub.s32 %s618_s16, %s764_s20 }
   0xa   : > { %p473_p6 = scmp.ge.s32.totalorder %s622_s17, 1  ;;  %p124_p7 = scmp.eq.s32.totalorder %s119_s23, 0 }
   0xb   : > { %p694_p8 = por %p143_p5, %p142_p3  ;;  %p188_p9 = scmp.lt.s32.totalorder %s622_s17, 3 }
   0xc   : > { %s700_s25 = scalar_select %p124_p7, %s610_s14, %s126_s21  }
   0xd   : > { %p189_p10 = pnand %p473_p6, %p188_p9 }
   0xe   : > { %p225_p11 = scmp.lt.s32.totalorder (!%p189_p10), %s614_s15, 1  ;;  %s221_s8 = sand.u32 (!%p189_p10), 1, %s606_s13  }
   0xf   : > { %192 = sbr.rel (%p189_p10) target bundleno = 241 (0xf1), region = 32  ;;  %s474_s9 = sshll.u32 (!%p189_p10), %s221_s8, 4 }
  0x10   : > { %s486_s10 = sshll.u32 (!%p189_p10), %s614_s15, 8  ;;  %s223_s11 = scalar_lea.vmem (!%p189_p10), [#allocation2], %s474_s9 }
  0x11   : > { %s356_s18 = sshll.u32 (!%p189_p10), %s223_s11, 4  ;;  %s354_s23 = scalar_lea.hbm (!%p189_p10), %s755_s3, %s486_s10  ;;  %s357_s18 = int_to_ptr.vmem [resolvable:$true] %s356_s18 }
  0x12   : > { %s338_s26 = scalar_lea.sflag (!%p189_p10), [#allocation3], %s221_s8  ;;  %s546_s27 = scalar_lea.vmem (!%p189_p10), %s357_s18, 256 }
  0x13   : > { %p547_p12 = scmp.ne.s32.totalorder (!%p189_p10), %s357_s18, %s546_s27 }
  0x14   : > { %v624_v0 = vmov 0.0   ;;  %v625_v1 = vmov 0   ;;  %v245_v2 = vld [vmem:[%s754_s2] sm:$0xff]  ;;  %s226_s28 = scalar_select %p225_p11, %s614_s15, 1  ;;  %vm257_vm0 = vcmask 1043456   ;;  %vm253_vm1 = vcmask 31744  }
  0x15   : > { %326 = vmatprep.mubr.f32.mxu0 %v624_v0  ;;  %544 = vset.pattern.permute.xlu0 %v625_v1  ;;  %v243_v5 = vld [vmem:[%s753_s1] sm:$0xff]  ;;  %p548_p13 = pnand %p547_p12, %p687_p4 }
  0x16   : > { %248 = vperm.xlu0 %544, %v245_v2   ;;  %s485_s29 = sshll.u32 %s226_s28, 3  ;;  %s626_s28 = smov [#allocation2]  }
  0x17   : > { %s232_s5 = scalar_lea.vmem %s752_s0, %s485_s29  ;;  %p549_p0 = pneg %p548_p13 }
  0x18   : > { %v244_v3 = vld [vmem:[%s232_s5] sm:$0xff]  ;;  %s550_s15 = sshll.u32 %s626_s28, 4  ;;  %s551_s15 = int_to_ptr.vmem [resolvable:$false] %s550_s15 }
  0x19   : > { %v252_v4 = vcombine.high %v244_v3, %v244_v3  ;;  %s552_s29 = scalar_lea.vmem %s551_s15, 512  ;;  %p553_p1 = scmp.lt.s32.totalorder %s357_s18, %s551_s15 }
  0x1a   : > { %p554_p2 = scmp.lt.s32.totalorder %s552_s29, %s546_s27 }
  0x1b   : > { %477 = vmatprep.subr.msk.mxu0 %vm257_vm0, %v252_v4 }
  0x1c   : > { %478 = vmatpush1.msk.msra.mxu0 %vm257_vm0, %v244_v3  ;;  %p555_p3 = por %p554_p2, %p553_p1 }
  0x1d   : > { %479 = vmatmul.mubr.msk.f32.vlgmr.msra.gmra.mxu0 %vm253_vm1, %v243_v5 }
  0x1e   : > { %p556_p5 = pnand %p555_p3, %p549_p0 }
  0x91   : > { %v249_v6 = vpop.permute.xlu0 %248 }
  0xdd   : > { %v328_v7 = vpop.f32.mrf.mxu0 }
  0xde   : > { %v329_v8 = vadd.f32 %v328_v7, %v249_v6 }
  0xdf   : > { %v330_v9 = vpop.f32.mrf.mxu0 }
  0xe0   : > { %v333_v10 = vmax.f32 %v329_v8, 0.0  ;;  %v331_v11 = vadd.f32 %v330_v9, %v249_v6 }
  0xe2   : > { %335 = vst [vmem:[%s223_s11] sm:$0xff] %v333_v10  ;;  %v334_v12 = vmax.f32 %v331_v11, 0.0 }
  0xe4   : > { %336 = vst [vmem:[%s223_s11 + $0x8] sm:$0xff] %v334_v12 }
  0xe5   : > { %559 = shalt.err (!%p556_p5)
}
  0xe6   : > { %s560_s30 = scalar_lea.hbm %s354_s23, 256  ;;  %s564_s6 = scalar_lea.hbm %s755_s3, 512 }
  0xe7   : > { %p561_p6 = scmp.ne.s32.totalorder %s354_s23, %s560_s30  ;;  %p565_p10 = scmp.lt.s32.totalorder %s354_s23, %s755_s3 }
  0xe8   : > { %p566_p11 = scmp.lt.s32.totalorder %s564_s6, %s560_s30 }
  0xe9   : > { %p562_p7 = pnand %p561_p6, %p687_p4 }
  0xea   : > { %p567_p12 = por %p566_p11, %p565_p10 }
  0xeb   : > { %p563_p9 = pneg %p562_p7 }
  0xed   : > { %p568_p13 = pnand %p567_p12, %p563_p9 }
  0xef   : > { %571 = shalt.err (!%p568_p13)
}
  0xf0   : > { %487 = dma.vmem_to_hbm [thread:$0]  (%p687_p4), %s357_s18, 256, %s354_s23, %s338_s26  }
  0xf1 PF: > { %p493_p0 = scmp.ge.s32.totalorder %s622_s17, 2  ;;  %s368_s9 = sand.u32 1, %s602_s12  }
  0xf2   : > { %s369_s10 = scalar_lea.sflag [#allocation3], %s368_s9 }
  0xf3   : > { %p490_p1 = pnand %p493_p0, %p694_p8 }
  0xf5   : > { %p491_p2 = pneg %p490_p1 }
  0xf7   : > { %597 = dma.done.wait (%p491_p2), %s369_s10, 256  }
  0xf8   : > { %599 = vsyncadd (%p491_p2), %s369_s10, 4294967040  ;;  %s16_s17 = sadd.s32 1, %s622_s17   ;;  %s758_s12 = smov %s606_s13 }
  0xf9   : > { %p13_p3 = scmp.ge.s32.totalorder %s16_s17, 4   ;;  %s759_s13 = smov %s610_s14 }
  0xfa   : > { %s760_s14 = smov %s700_s25  ;;  %s761_s15 = smov %s618_s16 }
  0xfb   : > { %s762_s16 = smov %s764_s20  ;;  %15 = sbr.rel (!%p13_p3) target bundleno = 4 (0x4), region = 73 }
 0x100   :  { %374 = vsyncpa [#allocation3], 1 }
 0x101   :  { %376 = vsyncpa [#allocation3 + $0x1], 1 }

// kernel: tpu_custom_call.1
= control target key start
LH: loop header
LB: loop body
LE: loop exit
PB: predicated region body
PF: predicated region fallthrough
CT: control target
= control target key end

     0   :  { %8 = vsyncpa [#allocation3], 0  ;;  %s752_s0 = inlined_call_operand.vmem [shape: f32[2,4,256], index: 0, kind: input, shape index: {}]   ;;  %s753_s1 = inlined_call_operand.vmem [shape: f32[8,4], index: 1, kind: input, shape index: {}]   ;;  %s754_s2 = inlined_call_operand.vmem [shape: f32[8,1], index: 2, kind: input, shape index: {}]   ;;  %s755_s3 = inlined_call_operand.hbm [shape: f32[2,8,256], index: 3, kind: output, shape index: {}]  }
   0x1   :  { %10 = vsyncpa [#allocation3 + $0x1], 0  ;;  %s647_s12 = smov 0   ;;  %s649_s13 = smov 0  }
   0x2   :  { %s651_s14 = smov 0   ;;  %s653_s15 = smov 0  }
   0x3   :  { %s655_s16 = smov 0   ;;  %s657_s17 = smov 0  }
   0x4 LB: > { %s467_s18 = sadd.s32 4294967295, %s622_s17   ;;  %s468_s19 = sadd.s32 4294967294, %s622_s17   ;;  %s622_s17 = sphi %s657_s17, %s16_s17   ;;  %s618_s16 = sphi %s655_s16, %s762_s16   ;;  %s614_s15 = sphi %s653_s15, %s761_s15   ;;  %s610_s14 = sphi %s651_s14, %s760_s14   ;;  %s606_s13 = sphi %s649_s13, %s759_s13   ;;  %s602_s12 = sphi %s647_s12, %s758_s12  }
   0x5   : > { %s35_s20 = sadd.s32 1, %s618_s16  ;;  %s126_s21 = sadd.s32 1, %s610_s14 }
   0x6   : > { %p37_p0 = scmp.ge.s32.totalorder %s35_s20, 2  ;;  %p136_p1 = scmp.ne.s32.totalorder %s610_s14, %s606_s13 }
   0x7   : > { %p137_p2 = scmp.eq.s32.totalorder %s467_s18, 1  ;;  %p142_p3 = scmp.ne.s32.totalorder %s606_s13, %s602_s12 }
   0x8   : > { %s764_s20 = smov (%p37_p0, %s35_s20), 0  ;;  %p143_p5 = scmp.eq.s32.totalorder %s468_s19, 1 }
   0x9   : > { %p687_p4 = por %p137_p2, %p136_p1  ;;  %s119_s23 = ssub.s32 %s618_s16, %s764_s20 }
   0xa   : > { %p473_p6 = scmp.ge.s32.totalorder %s622_s17, 1  ;;  %p124_p7 = scmp.eq.s32.totalorder %s119_s23, 0 }
   0xb   : > { %p694_p8 = por %p143_p5, %p142_p3  ;;  %p188_p9 = scmp.lt.s32.totalorder %s622_s17, 3 }
   0xc   : > { %s700_s25 = scalar_select %p124_p7, %s610_s14, %s126_s21  }
   0xd   : > { %p189_p10 = pnand %p473_p6, %p188_p9 }
   0xe   : > { %p225_p11 = scmp.lt.s32.totalorder (!%p189_p10), %s614_s15, 1  ;;  %s221_s8 = sand.u32 (!%p189_p10), 1, %s606_s13  }
   0xf   : > { %192 = sbr.rel (%p189_p10) target bundleno = 241 (0xf1), region = 32  ;;  %s474_s9 = sshll.u32 (!%p189_p10), %s221_s8, 4 }
  0x10   : > { %s486_s10 = sshll.u32 (!%p189_p10), %s614_s15, 8  ;;  %s223_s11 = scalar_lea.vmem (!%p189_p10), [#allocation2], %s474_s9 }
  0x11   : > { %s356_s18 = sshll.u32 (!%p189_p10), %s223_s11, 4  ;;  %s354_s23 = scalar_lea.hbm (!%p189_p10), %s755_s3, %s486_s10  ;;  %s357_s18 = int_to_ptr.vmem [resolvable:$true] %s356_s18 }
  0x12   : > { %s338_s26 = scalar_lea.sflag (!%p189_p10), [#allocation3], %s221_s8  ;;  %s546_s27 = scalar_lea.vmem (!%p189_p10), %s357_s18, 256 }
  0x13   : > { %p547_p12 = scmp.ne.s32.totalorder (!%p189_p10), %s357_s18, %s546_s27 }
  0x14   : > { %v624_v0 = vmov 0.0   ;;  %v625_v1 = vmov 0   ;;  %v245_v2 = vld [vmem:[%s754_s2] sm:$0xff]  ;;  %s226_s28 = scalar_select %p225_p11, %s614_s15, 1  ;;  %vm257_vm0 = vcmask 1043456   ;;  %vm253_vm1 = vcmask 31744  }
  0x15   : > { %326 = vmatprep.mubr.f32.mxu0 %v624_v0  ;;  %544 = vset.pattern.permute.xlu0 %v625_v1  ;;  %v243_v5 = vld [vmem:[%s753_s1] sm:$0xff]  ;;  %p548_p13 = pnand %p547_p12, %p687_p4 }
  0x16   : > { %248 = vperm.xlu0 %544, %v245_v2   ;;  %s485_s29 = sshll.u32 %s226_s28, 3  ;;  %s626_s28 = smov [#allocation2]  }
  0x17   : > { %s232_s5 = scalar_lea.vmem %s752_s0, %s485_s29  ;;  %p549_p0 = pneg %p548_p13 }
  0x18   : > { %v244_v3 = vld [vmem:[%s232_s5] sm:$0xff]  ;;  %s550_s15 = sshll.u32 %s626_s28, 4  ;;  %s551_s15 = int_to_ptr.vmem [resolvable:$false] %s550_s15 }
  0x19   : > { %v252_v4 = vcombine.high %v244_v3, %v244_v3  ;;  %s552_s29 = scalar_lea.vmem %s551_s15, 512  ;;  %p553_p1 = scmp.lt.s32.totalorder %s357_s18, %s551_s15 }
  0x1a   : > { %p554_p2 = scmp.lt.s32.totalorder %s552_s29, %s546_s27 }
  0x1b   : > { %477 = vmatprep.subr.msk.mxu0 %vm257_vm0, %v252_v4 }
  0x1c   : > { %478 = vmatpush1.msk.msra.mxu0 %vm257_vm0, %v244_v3  ;;  %p555_p3 = por %p554_p2, %p553_p1 }
  0x1d   : > { %479 = vmatmul.mubr.msk.f32.vlgmr.msra.gmra.mxu0 %vm253_vm1, %v243_v5 }
  0x1e   : > { %p556_p5 = pnand %p555_p3, %p549_p0 }
  0x91   : > { %v249_v6 = vpop.permute.xlu0 %248 }
  0xdd   : > { %v328_v7 = vpop.f32.mrf.mxu0 }
  0xde   : > { %v329_v8 = vadd.f32 %v328_v7, %v249_v6 }
  0xdf   : > { %v330_v9 = vpop.f32.mrf.mxu0 }
  0xe0   : > { %v333_v10 = vmax.f32 %v329_v8, 0.0  ;;  %v331_v11 = vadd.f32 %v330_v9, %v249_v6 }
  0xe2   : > { %335 = vst [vmem:[%s223_s11] sm:$0xff] %v333_v10  ;;  %v334_v12 = vmax.f32 %v331_v11, 0.0 }
  0xe4   : > { %336 = vst [vmem:[%s223_s11 + $0x8] sm:$0xff] %v334_v12 }
  0xe5   : > { %559 = shalt.err (!%p556_p5)
}
  0xe6   : > { %s560_s30 = scalar_lea.hbm %s354_s23, 256  ;;  %s564_s6 = scalar_lea.hbm %s755_s3, 512 }
  0xe7   : > { %p561_p6 = scmp.ne.s32.totalorder %s354_s23, %s560_s30  ;;  %p565_p10 = scmp.lt.s32.totalorder %s354_s23, %s755_s3 }
  0xe8   : > { %p566_p11 = scmp.lt.s32.totalorder %s564_s6, %s560_s30 }
  0xe9   : > { %p562_p7 = pnand %p561_p6, %p687_p4 }
  0xea   : > { %p567_p12 = por %p566_p11, %p565_p10 }
  0xeb   : > { %p563_p9 = pneg %p562_p7 }
  0xed   : > { %p568_p13 = pnand %p567_p12, %p563_p9 }
  0xef   : > { %571 = shalt.err (!%p568_p13)
}
  0xf0   : > { %487 = dma.vmem_to_hbm [thread:$0]  (%p687_p4), %s357_s18, 256, %s354_s23, %s338_s26  }
  0xf1 PF: > { %p493_p0 = scmp.ge.s32.totalorder %s622_s17, 2  ;;  %s368_s9 = sand.u32 1, %s602_s12  }
  0xf2   : > { %s369_s10 = scalar_lea.sflag [#allocation3], %s368_s9 }
  0xf3   : > { %p490_p1 = pnand %p493_p0, %p694_p8 }
  0xf5   : > { %p491_p2 = pneg %p490_p1 }
  0xf7   : > { %597 = dma.done.wait (%p491_p2), %s369_s10, 256  }
  0xf8   : > { %599 = vsyncadd (%p491_p2), %s369_s10, 4294967040  ;;  %s16_s17 = sadd.s32 1, %s622_s17   ;;  %s758_s12 = smov %s606_s13 }
  0xf9   : > { %p13_p3 = scmp.ge.s32.totalorder %s16_s17, 4   ;;  %s759_s13 = smov %s610_s14 }
  0xfa   : > { %s760_s14 = smov %s700_s25  ;;  %s761_s15 = smov %s618_s16 }
  0xfb   : > { %s762_s16 = smov %s764_s20  ;;  %15 = sbr.rel (!%p13_p3) target bundleno = 4 (0x4), region = 73 }
 0x100   :  { %374 = vsyncpa [#allocation3], 1 }
 0x101   :  { %376 = vsyncpa [#allocation3 + $0x1], 1 }

</bundles_post_ra>
